<compile_context>
chip_gen: v6e
topology: v6e:2x2x1
jax: 0.10.0
libtpu: 0.0.40
codegen_flags: <defaults>
</compile_context>

<pallas_src>
import jax
import jax.numpy as jnp
from jax.experimental import pallas as pl
from jax.experimental.pallas import tpu as pltpu

EPS = 1e-5


def _pos_enc_kernel(pts_ref, feat_ref, w1_ref, b1_ref, w2_ref, b2_ref,
                    gamma_ref, beta_ref, out_ref):
    # pts_ref : (T, 3)     feat_ref : (T, C)
    # w1_ref  : (3, H)     b1_ref   : (1, H)
    # w2_ref  : (H, C)     b2_ref   : (1, C)
    # gamma_ref/beta_ref : (1, C)    out_ref : (T, C)
    pts = pts_ref[...].astype(jnp.float32)
    w1 = w1_ref[...]          # native dtype; promotes inside the FMAs below
    b1 = b1_ref[...]

    # Linear(3 -> H): K=3 wastes the MXU systolic depth -> do it on the VPU as
    # three unrolled FMAs (f32 accumulation via promotion).
    h = (pts[:, 0:1] * w1[0:1, :]
         + pts[:, 1:2] * w1[1:2, :]
         + pts[:, 2:3] * w1[2:3, :]
         + b1)
    h = jnp.maximum(h, 0.0)

    # Linear(H -> C) on the MXU in the weight's native dtype, f32 accumulation.
    # (bf16 weights => bf16 MXU rate; no f32 copy of w2 is ever materialized.)
    w2 = w2_ref[...]
    enc = jnp.dot(h.astype(w2.dtype), w2, preferred_element_type=jnp.float32)
    enc = enc + b2_ref[...]

    # Residual add + LayerNorm over last dim. Single-pass moments with the
    # variance clamped to >= 0 (guards f32 cancellation when |mean| >> std).
    x = feat_ref[...].astype(jnp.float32) + enc
    inv_c = 1.0 / x.shape[-1]
    s = jnp.sum(x, axis=-1, keepdims=True)
    s2 = jnp.sum(x * x, axis=-1, keepdims=True)
    mean = s * inv_c
    var = jnp.maximum(s2 * inv_c - mean * mean, 0.0)
    inv = jax.lax.rsqrt(var + EPS)
    y = (x - mean) * inv * gamma_ref[...] + beta_ref[...]

    out_ref[...] = y.astype(out_ref.dtype)


def lightweight_position_encoding(points, features, params, *, tile_rows=1024):
    """points: [B, N, 3], features: [B, N, C] -> [B, N, C] (features.dtype)."""
    B, N, _ = points.shape
    C = features.shape[-1]
    rows = B * N

    w1, b1, w2, b2, gamma, beta = params
    H = w1.shape[1]
    out_dtype = features.dtype

    pts_bytes = jnp.dtype(points.dtype).itemsize
    feat_bytes = jnp.dtype(features.dtype).itemsize
    out_bytes = jnp.dtype(out_dtype).itemsize
    w_bytes = jnp.dtype(w2.dtype).itemsize

    # --- row-tile granularity: sublane packing (8 f32 / 16 bf16 / 32 int8) ----
    gran = max(8, 32 // feat_bytes, 32 // out_bytes)

    # --- VMEM accounting -------------------------------------------------------
    # Constant operands are single-buffered (pl.Buffered(1)) -> counted once.
    const_bytes = sum(int(a.size) * jnp.dtype(a.dtype).itemsize
                      for a in (w1, b1, w2, b2, gamma, beta))
    # Per-row cost:
    #   double-buffered pipeline blocks: points, features, output
    #   in-kernel f32 temporaries: ~4 x (tile, C)  (x / enc / y / slack)
    #   hidden activation: (tile, H) f32 plus its native-dtype copy for the MXU
    per_row = (2 * (3 * pts_bytes + C * feat_bytes + C * out_bytes)
               + 4 * C * 4 + H * (4 + w_bytes))

    vmem_budget = 40 * 1024 * 1024          # conservative: fits v7x (64 MiB) too
    avail = max(vmem_budget - const_bytes, per_row * gran)
    max_tile = max(gran, (avail // per_row) // gran * gran)
    tile = max(gran, (min(int(tile_rows), max_tile) // gran) * gran)
    # Don't use a tile larger than the (granularity-rounded) problem itself.
    tile = min(tile, pl.cdiv(rows, gran) * gran)

    # Explicit scoped-VMEM limit: estimated footprint + headroom, capped for v7x.
    estimated = const_bytes + per_row * tile
    vmem_limit = int(min(56 * 1024 * 1024,
                         max(32 * 1024 * 1024, estimated * 5 // 4 + (2 << 20))))

    # --- non-divisible grid: Pallas masks the ragged tail tile on writeback ----
    grid = (pl.cdiv(rows, tile),)
    pts2d = points.reshape(rows, 3)
    feat2d = features.reshape(rows, C)

    const1 = pl.Buffered(1)   # constant-index operands: single-buffered

    out = pl.pallas_call(
        _pos_enc_kernel,
        out_shape=jax.ShapeDtypeStruct((rows, C), out_dtype),
        grid_spec=pltpu.PrefetchScalarGridSpec(
            num_scalar_prefetch=0,
            grid=grid,
            in_specs=[
                pl.BlockSpec((tile, 3), lambda i: (i, 0)),    # points tile
                pl.BlockSpec((tile, C), lambda i: (i, 0)),    # features tile
                pl.BlockSpec((3, H), lambda i: (0, 0), pipeline_mode=const1),  # w1
                pl.BlockSpec((1, H), lambda i: (0, 0), pipeline_mode=const1),  # b1
                pl.BlockSpec((H, C), lambda i: (0, 0), pipeline_mode=const1),  # w2
                pl.BlockSpec((1, C), lambda i: (0, 0), pipeline_mode=const1),  # b2
                pl.BlockSpec((1, C), lambda i: (0, 0), pipeline_mode=const1),  # gamma
                pl.BlockSpec((1, C), lambda i: (0, 0), pipeline_mode=const1),  # beta
            ],
            out_specs=pl.BlockSpec((tile, C), lambda i: (i, 0)),
        ),
        compiler_params=pltpu.CompilerParams(
            dimension_semantics=("parallel",),
            vmem_limit_bytes=vmem_limit),
    )(pts2d, feat2d, w1, b1, w2, b2, gamma, beta)

    return out.reshape(B, N, C)


def init_params(key, d_model, dtype=jnp.float32):
    """Deterministic parameter init mirroring the module's shapes."""
    H = d_model // 2
    k1, k2, k3, k4 = jax.random.split(key, 4)
    # Linear(3, H)
    w1 = (jax.random.normal(k1, (3, H), jnp.float32) * 0.2).astype(dtype)
    b1 = (jax.random.normal(k2, (1, H), jnp.float32) * 0.05).astype(dtype)
    # Linear(H, d_model)
    w2 = (jax.random.normal(k3, (H, d_model), jnp.float32) * 0.2).astype(dtype)
    b2 = (jax.random.normal(k4, (1, d_model), jnp.float32) * 0.05).astype(dtype)
    # LayerNorm(d_model): gamma=1, beta=0 (PyTorch default init)
    gamma = jnp.ones((1, d_model), dtype)
    beta = jnp.zeros((1, d_model), dtype)
    return (w1, b1, w2, b2, gamma, beta)


def reference(points, features, params):
    w1, b1, w2, b2, gamma, beta = params
    pts = points.astype(jnp.float32)
    feat = features.astype(jnp.float32)
    h = jnp.maximum(pts @ w1.astype(jnp.float32) + b1.astype(jnp.float32), 0.0)
    enc = h @ w2.astype(jnp.float32) + b2.astype(jnp.float32)
    x = feat + enc
    mean = jnp.mean(x, axis=-1, keepdims=True)
    var = jnp.mean((x - mean) ** 2, axis=-1, keepdims=True)
    return ((x - mean) * jax.lax.rsqrt(var + EPS) * gamma.astype(jnp.float32)
            + beta.astype(jnp.float32))


if __name__ == "__main__":
    B, N, d_model = 2, 16, 32
    key = jax.random.PRNGKey(0)
    kp, kf, kw = jax.random.split(key, 3)

    points = jax.random.normal(kp, (B, N, 3), jnp.float32)
    features = jax.random.normal(kf, (B, N, d_model), jnp.float32)
    params = init_params(kw, d_model)

    out = lightweight_position_encoding(points, features, params)
    out = jax.block_until_ready(out)

    ref = reference(points, features, params)
    assert out.shape == (B, N, d_model)
    assert out.dtype == features.dtype
    assert jnp.allclose(out.astype(jnp.float32), ref, atol=1e-4, rtol=1e-4), \
        "mismatch vs pure-JAX reference"

    print("KERNEL_OK")
</pallas_src>

<mosaic_0001>
module attributes {stable_mosaic.version = 11 : i64} {
  func.func @_pos_enc_kernel(%arg0: i32, %arg1: memref<32x3xf32, #tpu.memory_space<vmem>>, %arg2: memref<32x32xf32, #tpu.memory_space<vmem>>, %arg3: memref<3x16xf32, #tpu.memory_space<vmem>>, %arg4: memref<1x16xf32, #tpu.memory_space<vmem>>, %arg5: memref<16x32xf32, #tpu.memory_space<vmem>>, %arg6: memref<1x32xf32, #tpu.memory_space<vmem>>, %arg7: memref<1x32xf32, #tpu.memory_space<vmem>>, %arg8: memref<1x32xf32, #tpu.memory_space<vmem>>, %arg9: memref<32x32xf32, #tpu.memory_space<vmem>>) attributes {dimension_semantics = [#tpu.dimension_semantics<parallel>], iteration_bounds = array<i64: 1>, scalar_prefetch = 0 : i64, scratch_operands = 0 : i64, tpu.core_type = #tpu.core_type<tc>, window_params = [{transform_indices = @transform_0, window_bounds = array<i64: 32, 3>}, {transform_indices = @transform_1, window_bounds = array<i64: 32, 32>}, {pipeline_mode = #tpu.pipeline_mode<synchronous>, transform_indices = @transform_2, window_bounds = array<i64: 3, 16>}, {pipeline_mode = #tpu.pipeline_mode<synchronous>, transform_indices = @transform_3, window_bounds = array<i64: 1, 16>}, {pipeline_mode = #tpu.pipeline_mode<synchronous>, transform_indices = @transform_4, window_bounds = array<i64: 16, 32>}, {pipeline_mode = #tpu.pipeline_mode<synchronous>, transform_indices = @transform_5, window_bounds = array<i64: 1, 32>}, {pipeline_mode = #tpu.pipeline_mode<synchronous>, transform_indices = @transform_6, window_bounds = array<i64: 1, 32>}, {pipeline_mode = #tpu.pipeline_mode<synchronous>, transform_indices = @transform_7, window_bounds = array<i64: 1, 32>}, {transform_indices = @transform_8, window_bounds = array<i64: 32, 32>}]} {
    %c0 = arith.constant 0 : index
    %c0_0 = arith.constant 0 : index
    %0 = vector.load %arg1[%c0, %c0_0] : memref<32x3xf32, #tpu.memory_space<vmem>>, vector<32x3xf32>
    %c0_1 = arith.constant 0 : index
    %c0_2 = arith.constant 0 : index
    %1 = vector.load %arg3[%c0_1, %c0_2] : memref<3x16xf32, #tpu.memory_space<vmem>>, vector<3x16xf32>
    %c0_3 = arith.constant 0 : index
    %c0_4 = arith.constant 0 : index
    %2 = vector.load %arg4[%c0_3, %c0_4] : memref<1x16xf32, #tpu.memory_space<vmem>>, vector<1x16xf32>
    %3 = vector.extract_strided_slice %0 {offsets = [0, 0], sizes = [32, 1], strides = [1, 1]} : vector<32x3xf32> to vector<32x1xf32>
    %4 = vector.extract_strided_slice %1 {offsets = [0, 0], sizes = [1, 16], strides = [1, 1]} : vector<3x16xf32> to vector<1x16xf32>
    %5 = vector.broadcast %3 : vector<32x1xf32> to vector<32x16xf32>
    %6 = vector.broadcast %4 : vector<1x16xf32> to vector<32x16xf32>
    %7 = arith.mulf %5, %6 : vector<32x16xf32>
    %8 = vector.extract_strided_slice %0 {offsets = [0, 1], sizes = [32, 1], strides = [1, 1]} : vector<32x3xf32> to vector<32x1xf32>
    %9 = vector.extract_strided_slice %1 {offsets = [1, 0], sizes = [1, 16], strides = [1, 1]} : vector<3x16xf32> to vector<1x16xf32>
    %10 = vector.broadcast %8 : vector<32x1xf32> to vector<32x16xf32>
    %11 = vector.broadcast %9 : vector<1x16xf32> to vector<32x16xf32>
    %12 = arith.mulf %10, %11 : vector<32x16xf32>
    %13 = arith.addf %7, %12 : vector<32x16xf32>
    %14 = vector.extract_strided_slice %0 {offsets = [0, 2], sizes = [32, 1], strides = [1, 1]} : vector<32x3xf32> to vector<32x1xf32>
    %15 = vector.extract_strided_slice %1 {offsets = [2, 0], sizes = [1, 16], strides = [1, 1]} : vector<3x16xf32> to vector<1x16xf32>
    %16 = vector.broadcast %14 : vector<32x1xf32> to vector<32x16xf32>
    %17 = vector.broadcast %15 : vector<1x16xf32> to vector<32x16xf32>
    %18 = arith.mulf %16, %17 : vector<32x16xf32>
    %19 = arith.addf %13, %18 : vector<32x16xf32>
    %20 = vector.broadcast %2 : vector<1x16xf32> to vector<32x16xf32>
    %21 = arith.addf %19, %20 : vector<32x16xf32>
    %cst = arith.constant 0.000000e+00 : f32
    %22 = vector.broadcast %cst : f32 to vector<32x16xf32>
    %23 = arith.maximumf %21, %22 : vector<32x16xf32>
    %c0_5 = arith.constant 0 : index
    %c0_6 = arith.constant 0 : index
    %24 = vector.load %arg5[%c0_5, %c0_6] : memref<16x32xf32, #tpu.memory_space<vmem>>, vector<16x32xf32>
    %cst_7 = arith.constant dense<0.000000e+00> : vector<32x32xf32>
    %25 = tpu.matmul %23, %24, %cst_7 {dimension_numbers = #tpu.dot_dimension_numbers<[1], [0], [0], [1], [0, 0, 1, 1], [], []>} : vector<32x16xf32>, vector<16x32xf32>, vector<32x32xf32> -> vector<32x32xf32>
    %c0_8 = arith.constant 0 : index
    %c0_9 = arith.constant 0 : index
    %26 = vector.load %arg6[%c0_8, %c0_9] : memref<1x32xf32, #tpu.memory_space<vmem>>, vector<1x32xf32>
    %27 = vector.broadcast %26 : vector<1x32xf32> to vector<32x32xf32>
    %28 = arith.addf %25, %27 : vector<32x32xf32>
    %c0_10 = arith.constant 0 : index
    %c0_11 = arith.constant 0 : index
    %29 = vector.load %arg2[%c0_10, %c0_11] : memref<32x32xf32, #tpu.memory_space<vmem>>, vector<32x32xf32>
    %30 = arith.addf %29, %28 : vector<32x32xf32>
    %cst_12 = arith.constant dense<0.000000e+00> : vector<32xf32>
    %31 = vector.multi_reduction <add>, %30, %cst_12 [1] : vector<32x32xf32> to vector<32xf32>
    %32 = vector.shape_cast %31 : vector<32xf32> to vector<32x1xf32>
    %33 = arith.mulf %30, %30 : vector<32x32xf32>
    %cst_13 = arith.constant dense<0.000000e+00> : vector<32xf32>
    %34 = vector.multi_reduction <add>, %33, %cst_13 [1] : vector<32x32xf32> to vector<32xf32>
    %35 = vector.shape_cast %34 : vector<32xf32> to vector<32x1xf32>
    %cst_14 = arith.constant 3.125000e-02 : f32
    %36 = vector.broadcast %cst_14 : f32 to vector<32x1xf32>
    %37 = arith.mulf %32, %36 : vector<32x1xf32>
    %cst_15 = arith.constant 3.125000e-02 : f32
    %38 = vector.broadcast %cst_15 : f32 to vector<32x1xf32>
    %39 = arith.mulf %35, %38 : vector<32x1xf32>
    %40 = arith.mulf %37, %37 : vector<32x1xf32>
    %41 = arith.subf %39, %40 : vector<32x1xf32>
    %cst_16 = arith.constant 0.000000e+00 : f32
    %42 = vector.broadcast %cst_16 : f32 to vector<32x1xf32>
    %43 = arith.maximumf %41, %42 : vector<32x1xf32>
    %cst_17 = arith.constant 9.99999974E-6 : f32
    %44 = vector.broadcast %cst_17 : f32 to vector<32x1xf32>
    %45 = arith.addf %43, %44 : vector<32x1xf32>
    %46 = math.rsqrt %45 : vector<32x1xf32>
    %47 = vector.broadcast %37 : vector<32x1xf32> to vector<32x32xf32>
    %48 = arith.subf %30, %47 : vector<32x32xf32>
    %49 = vector.broadcast %46 : vector<32x1xf32> to vector<32x32xf32>
    %50 = arith.mulf %48, %49 : vector<32x32xf32>
    %c0_18 = arith.constant 0 : index
    %c0_19 = arith.constant 0 : index
    %51 = vector.load %arg7[%c0_18, %c0_19] : memref<1x32xf32, #tpu.memory_space<vmem>>, vector<1x32xf32>
    %52 = vector.broadcast %51 : vector<1x32xf32> to vector<32x32xf32>
    %53 = arith.mulf %50, %52 : vector<32x32xf32>
    %c0_20 = arith.constant 0 : index
    %c0_21 = arith.constant 0 : index
    %54 = vector.load %arg8[%c0_20, %c0_21] : memref<1x32xf32, #tpu.memory_space<vmem>>, vector<1x32xf32>
    %55 = vector.broadcast %54 : vector<1x32xf32> to vector<32x32xf32>
    %56 = arith.addf %53, %55 : vector<32x32xf32>
    %c0_22 = arith.constant 0 : index
    %c0_23 = arith.constant 0 : index
    %57 = vector.load %arg9[%c0_22, %c0_23] : memref<32x32xf32, #tpu.memory_space<vmem>>, vector<32x32xf32>
    tpu.vector_store %arg9[%c0_22, %c0_23], %56 {strides = array<i32>} : memref<32x32xf32, #tpu.memory_space<vmem>>, vector<32x32xf32>,
    return
  }
  func.func @transform_0(%arg0: i32) -> (i32, i32) {
    %c0_i32 = arith.constant 0 : i32
    %c0_i32_0 = arith.constant 0 : i32
    return %arg0, %c0_i32 : i32, i32
  }
  func.func @transform_1(%arg0: i32) -> (i32, i32) {
    %c0_i32 = arith.constant 0 : i32
    %c0_i32_0 = arith.constant 0 : i32
    return %arg0, %c0_i32 : i32, i32
  }
  func.func @transform_2(%arg0: i32) -> (i32, i32) {
    %c0_i32 = arith.constant 0 : i32
    %c0_i32_0 = arith.constant 0 : i32
    %c0_i32_1 = arith.constant 0 : i32
    return %c0_i32, %c0_i32_0 : i32, i32
  }
  func.func @transform_3(%arg0: i32) -> (i32, i32) {
    %c0_i32 = arith.constant 0 : i32
    %c0_i32_0 = arith.constant 0 : i32
    %c0_i32_1 = arith.constant 0 : i32
    return %c0_i32, %c0_i32_0 : i32, i32
  }
  func.func @transform_4(%arg0: i32) -> (i32, i32) {
    %c0_i32 = arith.constant 0 : i32
    %c0_i32_0 = arith.constant 0 : i32
    %c0_i32_1 = arith.constant 0 : i32
    return %c0_i32, %c0_i32_0 : i32, i32
  }
  func.func @transform_5(%arg0: i32) -> (i32, i32) {
    %c0_i32 = arith.constant 0 : i32
    %c0_i32_0 = arith.constant 0 : i32
    %c0_i32_1 = arith.constant 0 : i32
    return %c0_i32, %c0_i32_0 : i32, i32
  }
  func.func @transform_6(%arg0: i32) -> (i32, i32) {
    %c0_i32 = arith.constant 0 : i32
    %c0_i32_0 = arith.constant 0 : i32
    %c0_i32_1 = arith.constant 0 : i32
    return %c0_i32, %c0_i32_0 : i32, i32
  }
  func.func @transform_7(%arg0: i32) -> (i32, i32) {
    %c0_i32 = arith.constant 0 : i32
    %c0_i32_0 = arith.constant 0 : i32
    %c0_i32_1 = arith.constant 0 : i32
    return %c0_i32, %c0_i32_0 : i32, i32
  }
  func.func @transform_8(%arg0: i32) -> (i32, i32) {
    %c0_i32 = arith.constant 0 : i32
    %c0_i32_0 = arith.constant 0 : i32
    return %arg0, %c0_i32 : i32, i32
  }
}

</mosaic_0001>

<bundles_post_ra>
// kernel: tpu_custom_call.1
= control target key start
LH: loop header
LB: loop body
LE: loop exit
PB: predicated region body
PF: predicated region fallthrough
CT: control target
= control target key end

     0   :  { %13 = vsyncpa [#allocation3], 0  ;;  %s608_s0 = inlined_call_operand.vmem [shape: f32[32,3], index: 0, kind: input, shape index: {}]   ;;  %s609_s1 = inlined_call_operand.vmem [shape: f32[32,32], index: 1, kind: input, shape index: {}]   ;;  %s610_s2 = inlined_call_operand.vmem [shape: f32[3,16], index: 2, kind: input, shape index: {}]   ;;  %s611_s3 = inlined_call_operand.vmem [shape: f32[1,16], index: 3, kind: input, shape index: {}]   ;;  %s612_s4 = inlined_call_operand.hbm [shape: f32[16,32], index: 4, kind: input, shape index: {}]   ;;  %s613_s5 = inlined_call_operand.vmem [shape: f32[1,32], index: 5, kind: input, shape index: {}]   ;;  %s614_s6 = inlined_call_operand.vmem [shape: f32[1,32], index: 6, kind: input, shape index: {}]   ;;  %s615_s7 = inlined_call_operand.vmem [shape: f32[1,32], index: 7, kind: input, shape index: {}]   ;;  %s616_s8 = inlined_call_operand.hbm [shape: f32[32,32], index: 8, kind: output, shape index: {}]  }
   0x1   :  { %14 = vsyncpa [#allocation4], 0  ;;  %s465_s27 = smov [#allocation2]  }
   0x2   :  { %s28_s28 = sshll.u32 %s465_s27, 4  ;;  %s29_s28 = int_to_ptr.vmem [resolvable:$true] %s28_s28 }
   0x3   :  { %s429_s29 = scalar_lea.vmem %s29_s28, 256  ;;  %p434_p1 = scmp.lt.s32.totalorder %s29_s28, %s29_s28 }
   0x4   :  { %p430_p0 = scmp.ne.s32.totalorder %s29_s28, %s429_s29  ;;  %p435_p2 = scmp.lt.s32.totalorder %s429_s29, %s429_s29 }
   0x6   :  { %p436_p3 = por %p435_p2, %p434_p1 }
   0x8   :  { %p437_p4 = pnand %p436_p3, %p430_p0 }
   0xa   :  { %440 = shalt.err (!%p437_p4)
}
   0xb   :  { %s466_s30 = smov 128   ;;  %s467_s9 = smov 8  }
   0xc   :  { %34 = dma.hbm_to_vmem [thread:$0]  %s612_s4, 256, %s29_s28, [#allocation3], %s466_s30, %s466_s30, %s467_s9  }
   0xd   :  { %461 = dma.done.wait [#allocation3], 256  }
   0xe   :  { %462 = vsyncadd [#allocation3], 4294967040  ;;  %v468_v0 = vmov 1   ;;  %v469_v1 = vmov 0   ;;  %v44_v2 = vld [vmem:[%s608_s0] sm:$0xff]  ;;  %v46_v3 = vld [vmem:[%s608_s0 + $0x10] sm:$0xff]  ;;  %v70_v9 = vlaneseq }
   0xf   :  { %407 = vset.pattern.permute.xlu1 %v468_v0  ;;  %406 = vset.pattern.permute.xlu0 %v469_v1  ;;  %v45_v4 = vld [vmem:[%s608_s0 + $0x8] sm:$0xff]  ;;  %v47_v5 = vld [vmem:[%s608_s0 + $0x18] sm:$0xff]  ;;  %v470_v6 = vmov 2   ;;  %v148_v8 = vld [vmem:[#allocation2] sm:$0xff]  ;;  %vm157_vm0 = vcmask 130048   ;;  %vm263_vm1 = vcmask 261120  }
  0x10   :  { %79 = vperm.xlu1 %407, %v44_v2   ;;  %52 = vperm.xlu0 %406, %v44_v2   ;;  %v149_v7 = vld [vmem:[#allocation2 + $0x8] sm:$0xff]  ;;  %v71_v12 = vshrl.u32 %v70_v9, 7  ;;  %v48_v18 = vld [vmem:[%s610_s2] sm:$0x7]  ;;  %v257_v9 = vld [vmem:[%s609_s1 + $0x10] sm:$0xff] }
  0x11   :  { %385 = vmatprep.subr.mxu0 %v149_v7  ;;  %395 = vmatprep.subr.mxu1 %v149_v7  ;;  %v371_v37 = vld [vmem:[%s611_s3] ss:$0 sm:$0xff]  ;;  %v256_v61 = vld [vmem:[%s609_s1 + $0x8] sm:$0xff] }
  0x12   :  { %386 = vmatpush3.msra.mxu0 %v149_v7  ;;  %397 = vmatpush3.msra.mxu1 %v149_v7  ;;  %v96_v15 = vsub.s32 1, %v71_v12  ;;  %v72_v16 = vsub.s32 0, %v71_v12  ;;  %v124_v20 = vsub.s32 2, %v71_v12  ;;  %v372_v59 = vld [vmem:[%s613_s5] ss:$0 sm:$0xff] }
  0x13   :  { %387 = vmatprep.subr.mxu0 %v148_v8  ;;  %396 = vmatprep.subr.mxu1 %v148_v8 }
  0x14   :  { %87 = vperm.xlu1 %407, %v46_v3   ;;  %62 = vperm.xlu0 %406, %v46_v3   ;;  %v97_v21 = vrot.slane %v48_v18, %v96_v15  ;;  %v73_v22 = vrot.slane %v48_v18, %v72_v16  ;;  %v125_v27 = vrot.slane %v48_v18, %v124_v20 }
  0x15   :  { %388 = vmatpush3.msra.mxu0 %v148_v8  ;;  %398 = vmatpush3.msra.mxu1 %v148_v8 }
  0x18   :  { %408 = vset.pattern.permute.xlu1 %v469_v1  ;;  %57 = vperm.xlu0 %406, %v45_v4  }
  0x19   :  { %67 = vperm.xlu1 %408, %v47_v5  }
  0x1c   :  { %409 = vset.pattern.permute.xlu0 %v468_v0 }
  0x1d   :  { %410 = vset.pattern.permute.xlu1 %v468_v0  ;;  %83 = vperm.xlu0 %409, %v45_v4   ;;  %v255_v0 = vld [vmem:[%s609_s1] sm:$0xff] }
  0x1e   :  { %91 = vperm.xlu1 %410, %v47_v5  }
  0x21   :  { %412 = vset.pattern.permute.xlu0 %v470_v6 }
  0x22   :  { %411 = vset.pattern.permute.xlu1 %v470_v6  ;;  %115 = vperm.xlu0 %412, %v46_v3  }
  0x23   :  { %107 = vperm.xlu1 %411, %v44_v2  }
  0x27   :  { %111 = vperm.xlu1 %411, %v45_v4   ;;  %v258_v4 = vld [vmem:[%s609_s1 + $0x18] sm:$0xff] }
  0x2b   :  { %119 = vperm.xlu1 %411, %v47_v5  }
  0x8b   :  { %v80_v10 = vpop.permute.xlu1 %79  ;;  %v53_v11 = vpop.permute.xlu0 %52 }
  0x8c   :  { %v98_v28 = vmul.f32 %v97_v21, %v80_v10  ;;  %v74_v29 = vmul.f32 %v73_v22, %v53_v11 }
  0x8e   :  { %v102_v34 = vadd.f32 %v98_v28, %v74_v29 }
  0x8f   :  { %v88_v13 = vpop.permute.xlu1 %87  ;;  %v63_v14 = vpop.permute.xlu0 %62 }
  0x90   :  { %v100_v25 = vmul.f32 %v97_v21, %v88_v13  ;;  %v76_v26 = vmul.f32 %v73_v22, %v63_v14 }
  0x92   :  { %v104_v31 = vadd.f32 %v100_v25, %v76_v26 }
  0x93   :  { %v58_v17 = vpop.permute.xlu0 %57 }
  0x94   :  { %v68_v19 = vpop.permute.xlu1 %67  ;;  %v75_v39 = vmul.f32 %v73_v22, %v58_v17 }
  0x95   :  { %v77_v48 = vmul.f32 %v73_v22, %v68_v19 }
  0x98   :  { %v84_v23 = vpop.permute.xlu0 %83 }
  0x99   :  { %v92_v24 = vpop.permute.xlu1 %91  ;;  %v99_v35 = vmul.f32 %v97_v21, %v84_v23 }
  0x9a   :  { %v101_v44 = vmul.f32 %v97_v21, %v92_v24 }
  0x9b   :  { %v103_v43 = vadd.f32 %v99_v35, %v75_v39 }
  0x9c   :  { %v105_v52 = vadd.f32 %v101_v44, %v77_v48 }
  0x9d   :  { %v116_v30 = vpop.permute.xlu0 %115 }
  0x9e   :  { %v128_v32 = vmul.f32 %v125_v27, %v116_v30  ;;  %v108_v33 = vpop.permute.xlu1 %107 }
  0x9f   :  { %v126_v36 = vmul.f32 %v125_v27, %v108_v33 }
  0xa0   :  { %v132_v38 = vadd.f32 %v128_v32, %v104_v31 }
  0xa1   :  { %v130_v40 = vadd.f32 %v126_v36, %v102_v34 }
  0xa2   :  { %v112_v41 = vpop.permute.xlu1 %111  ;;  %v142_v42 = vadd.f32 %v371_v37, %v132_v38 }
  0xa3   :  { %v127_v45 = vmul.f32 %v125_v27, %v112_v41  ;;  %v140_v46 = vadd.f32 %v371_v37, %v130_v40 }
  0xa4   :  { %v146_v47 = vmax.f32 %v142_v42, 0.0 }
  0xa5   :  { %v131_v49 = vadd.f32 %v127_v45, %v103_v43  ;;  %v144_v50 = vmax.f32 %v140_v46, 0.0 }
  0xa6   :  { %v120_v51 = vpop.permute.xlu1 %119  ;;  %392 = vmatprep.mubr.msk.f32.mxu1 %vm157_vm0, %v146_v47 }
  0xa7   :  { %v141_v53 = vadd.f32 %v371_v37, %v131_v49  ;;  %v129_v54 = vmul.f32 %v125_v27, %v120_v51  ;;  %389 = vmatprep.mubr.msk.f32.mxu0 %vm157_vm0, %v144_v50 }
  0xa9   :  { %v145_v55 = vmax.f32 %v141_v53, 0.0  ;;  %v133_v56 = vadd.f32 %v129_v54, %v105_v52 }
  0xab   :  { %v143_v57 = vadd.f32 %v371_v37, %v133_v56  ;;  %390 = vmatmul.mubr.msk.f32.vlgmr.msra.gmra.mxu0 %vm157_vm0, %v145_v55 }
  0xad   :  { %v147_v58 = vmax.f32 %v143_v57, 0.0 }
  0xaf   :  { %393 = vmatmul.mubr.msk.f32.vlgmr.msra.gmra.mxu1 %vm157_vm0, %v147_v58  ;;  %v377_v58 = vld [vmem:[%s614_s6] ss:$0 sm:$0xff]  ;;  %s471_s6 = smov [#allocation5]  }
 0x16b   :  { %v391_v60 = vpop.f32.mrf.mxu0 }
 0x16c   :  { %v242_v62 = vadd.f32 %v391_v60, %v372_v59  ;;  %v378_v60 = vld [vmem:[%s615_s7] ss:$0 sm:$0xff]  ;;  %s359_s7 = sshll.u32 %s471_s6, 4  ;;  %s360_s7 = int_to_ptr.vmem [resolvable:$true] %s359_s7 }
 0x16d   :  { %v236_v63 = vpop.f32.mrf.mxu0  ;;  %s441_s12 = scalar_lea.vmem %s360_s7, 512  ;;  %p446_p6 = scmp.lt.s32.totalorder %s360_s7, %s360_s7 }
 0x16e   :  { %v554_v1 = vadd.f32 %v256_v61, %v242_v62  ;;  %v237_v2 = vadd.f32 %v372_v59, %v236_v63  ;;  %p442_p5 = scmp.ne.s32.totalorder %s360_s7, %s441_s12  ;;  %p447_p7 = scmp.lt.s32.totalorder %s441_s12, %s441_s12 }
 0x16f   :  { %v394_v3 = vpop.f32.mrf.mxu1 }
 0x170   :  { %v559_v5 = vadd.f32 %v255_v0, %v237_v2  ;;  %v252_v6 = vadd.f32 %v394_v3, %v372_v59  ;;  %v267_v7 = vsel %vm263_vm1, %v554_v1, 0.0  ;;  %v277_v20 = vmul.f32 %v554_v1, %v554_v1  ;;  %p448_p8 = por %p447_p7, %p446_p6 }
 0x171   :  { %268 = vadd.xlane.f32.xlu1 %v267_v7  ;;  %v246_v8 = vpop.f32.mrf.mxu1 }
 0x172   :  { %v566_v10 = vadd.f32 %v258_v4, %v252_v6  ;;  %v247_v11 = vadd.f32 %v372_v59, %v246_v8  ;;  %v276_v12 = vmul.f32 %v559_v5, %v559_v5  ;;  %v264_v17 = vsel %vm263_vm1, %v559_v5, 0.0  ;;  %p449_p9 = pnand %p448_p8, %p442_p5 }
 0x173   :  { %v283_v21 = vsel %vm263_vm1, %v277_v20, 0.0 }
 0x174   :  { %v570_v13 = vadd.f32 %v257_v9, %v247_v11  ;;  %v280_v14 = vsel %vm263_vm1, %v276_v12, 0.0  ;;  %v273_v15 = vsel %vm263_vm1, %v566_v10, 0.0  ;;  %v279_v22 = vmul.f32 %v566_v10, %v566_v10 }
 0x175   :  { %281 = vadd.xlane.f32.xlu1 %v280_v14  ;;  %274 = vadd.xlane.f32.xlu0 %v273_v15 }
 0x176   :  { %v278_v16 = vmul.f32 %v570_v13, %v570_v13  ;;  %v270_v19 = vsel %vm263_vm1, %v570_v13, 0.0  ;;  %v289_v23 = vsel %vm263_vm1, %v279_v22, 0.0 }
 0x178   :  { %v286_v18 = vsel %vm263_vm1, %v278_v16, 0.0 }
 0x179   :  { %265 = vadd.xlane.f32.xlu0 %v264_v17  ;;  %287 = vadd.xlane.f32.xlu1 %v286_v18 }
 0x17d   :  { %271 = vadd.xlane.f32.xlu0 %v270_v19 }
 0x181   :  { %284 = vadd.xlane.f32.xlu0 %v283_v21 }
 0x185   :  { %290 = vadd.xlane.f32.xlu0 %v289_v23 }
 0x1fa   :  { %v269_v24 = vpop.xlane.xlu1 %268 }
 0x1fb   :  { %v293_v31 = vmul.f32 0.03125, %v269_v24 }
 0x1fd   :  { %v301_v39 = vmul.f32 %v293_v31, %v293_v31  ;;  %v321_v0 = vsub.f32 %v554_v1, %v293_v31 }
 0x1fe   :  { %v275_v25 = vpop.xlane.xlu0 %274  ;;  %v282_v26 = vpop.xlane.xlu1 %281 }
 0x1ff   :  { %v296_v29 = vmul.f32 0.03125, %v282_v26  ;;  %v295_v41 = vmul.f32 0.03125, %v275_v25 }
 0x201   :  { %v303_v48 = vmul.f32 %v295_v41, %v295_v41  ;;  %v323_v7 = vsub.f32 %v566_v10, %v295_v41 }
 0x202   :  { %v266_v27 = vpop.xlane.xlu0 %265  ;;  %v288_v32 = vpop.xlane.xlu1 %287 }
 0x203   :  { %v292_v28 = vmul.f32 0.03125, %v266_v27  ;;  %v298_v37 = vmul.f32 0.03125, %v288_v32 }
 0x205   :  { %v300_v30 = vmul.f32 %v292_v28, %v292_v28  ;;  %v320_v56 = vsub.f32 %v559_v5, %v292_v28 }
 0x206   :  { %v272_v33 = vpop.xlane.xlu0 %271 }
 0x207   :  { %v304_v34 = vsub.f32 %v296_v29, %v300_v30  ;;  %v294_v35 = vmul.f32 0.03125, %v272_v33 }
 0x209   :  { %v308_v36 = vmax.f32 %v304_v34, 0.0  ;;  %v302_v38 = vmul.f32 %v294_v35, %v294_v35  ;;  %v322_v62 = vsub.f32 %v570_v13, %v294_v35 }
 0x20a   :  { %v285_v40 = vpop.xlane.xlu0 %284 }
 0x20b   :  { %v312_v42 = vadd.f32 1e-05, %v308_v36  ;;  %v306_v43 = vsub.f32 %v298_v37, %v302_v38  ;;  %v297_v44 = vmul.f32 0.03125, %v285_v40 }
 0x20d   :  { %413 = vrsqrt.f32 %v312_v42  ;;  %v310_v45 = vmax.f32 %v306_v43, 0.0  ;;  %v305_v46 = vsub.f32 %v297_v44, %v301_v39 }
 0x20e   :  { %v291_v47 = vpop.xlane.xlu0 %290 }
 0x20f   :  { %v314_v49 = vadd.f32 1e-05, %v310_v45  ;;  %v309_v50 = vmax.f32 %v305_v46, 0.0  ;;  %v299_v51 = vmul.f32 0.03125, %v291_v47 }
 0x211   :  { %415 = vrsqrt.f32 %v314_v49  ;;  %v313_v52 = vadd.f32 1e-05, %v309_v50  ;;  %v307_v53 = vsub.f32 %v299_v51, %v303_v48 }
 0x213   :  { %417 = vrsqrt.f32 %v313_v52  ;;  %v311_v54 = vmax.f32 %v307_v53, 0.0 }
 0x215   :  { %v315_v55 = vadd.f32 1e-05, %v311_v54 }
 0x217   :  { %419 = vrsqrt.f32 %v315_v55 }
 0x21a   :  { %v414_v57 = vpop.eup %413 }
 0x21b   :  { %v324_v59 = vmul.f32 %v414_v57, %v320_v56 }
 0x21d   :  { %v335_v61 = vmul.f32 %v377_v58, %v324_v59 }
 0x21e   :  { %v416_v63 = vpop.eup %415 }
 0x21f   :  { %v346_v2 = vadd.f32 %v378_v60, %v335_v61  ;;  %v326_v3 = vmul.f32 %v416_v63, %v322_v62 }
 0x220   :  { %v418_v4 = vpop.eup %417 }
 0x221   :  { %350 = vst.msk [vmem:[#allocation5] sm:$0xff] %vm263_vm1, %v346_v2  ;;  %v337_v5 = vmul.f32 %v377_v58, %v326_v3  ;;  %v325_v6 = vmul.f32 %v418_v4, %v321_v0 }
 0x223   :  { %v348_v8 = vadd.f32 %v378_v60, %v337_v5  ;;  %v336_v9 = vmul.f32 %v377_v58, %v325_v6 }
 0x224   :  { %v420_v11 = vpop.eup %419 }
 0x225   :  { %352 = vst.msk [vmem:[#allocation5 + $0x10] sm:$0xff] %vm263_vm1, %v348_v8  ;;  %v327_v12 = vmul.f32 %v420_v11, %v323_v7  ;;  %v347_v14 = vadd.f32 %v378_v60, %v336_v9 }
 0x227   :  { %v338_v13 = vmul.f32 %v377_v58, %v327_v12  ;;  %351 = vst.msk [vmem:[#allocation5 + $0x8] sm:$0xff] %vm263_vm1, %v347_v14 }
 0x229   :  { %v349_v1 = vadd.f32 %v378_v60, %v338_v13 }
 0x22b   :  { %353 = vst.msk [vmem:[#allocation5 + $0x18] sm:$0xff] %vm263_vm1, %v349_v1 }
 0x22c   :  { %452 = shalt.err (!%p449_p9)
}
 0x22d   :  { %365 = dma.vmem_to_hbm [thread:$0]  %s360_s7, 512, %s616_s8, [#allocation4], %s466_s30, %s466_s30, %s467_s9  }
 0x22e   :  { %463 = dma.done.wait [#allocation4], 512  }
 0x22f   :  { %464 = vsyncadd [#allocation4], 4294966784 }
 0x230   :  { %369 = vsyncpa [#allocation3], 1 }
 0x231   :  { %370 = vsyncpa [#allocation4], 1 }

</bundles_post_ra>
